<compile_context>
chip_gen: v6e
topology: v6e:2x2x1
jax: 0.10.0
libtpu: 0.0.40
codegen_flags: <defaults>
</compile_context>

<pallas_src>
import numpy as np
import jax
import jax.numpy as jnp
from jax.experimental import pallas as pl
from jax.experimental.pallas import tpu as pltpu


# ------------------------------- kernel ------------------------------------- #
def _bpf_inv_kernel(xcat_ref, fb2_ref, binv_ref, o_ref, acc_ref):
    """Per-filter gain multiply + inverse real DFT.

    grid = (Np//TN, 2Kp//TK): axis 0 tiles the output/time axis ("parallel",
    megacore-shardable), axis 1 tiles the spectral reduction ("arbitrary",
    accumulated in f32 VMEM scratch).
    """
    k = pl.program_id(1)

    @pl.when(k == 0)
    def _():
        acc_ref[...] = jnp.zeros_like(acc_ref)

    xcat = xcat_ref[...]                        # (B, TK)      f32 shared spectrum
    fb2 = fb2_ref[...]                          # (F_pad, TK)  f32 per-filter gains
    B, TK = xcat.shape
    Fp = fb2.shape[0]
    # lhs[b*Fp + f, :] = fb2[f, :] * xcat[b, :]  -> (B*Fp, TK) MXU LHS.
    # F_pad is a multiple of 8, TK a multiple of 128 -> the reshape is a free
    # sublane-dim collapse.
    lhs = (xcat[:, None, :] * fb2[None, :, :]).reshape(B * Fp, TK)
    acc_ref[...] += jnp.dot(lhs.astype(binv_ref.dtype), binv_ref[...],
                            preferred_element_type=jnp.float32)  # (B*Fp, TN)

    @pl.when(k == pl.num_programs(1) - 1)
    def _():
        Bo, Fo, TN = o_ref.shape
        o_ref[...] = acc_ref[...].reshape(Bo, Fo, TN).astype(o_ref.dtype)


# ------------------------------- helpers ------------------------------------ #
def _round_up(x, m):
    return ((x + m - 1) // m) * m


def _pick_tile(total, target, mult=128):
    """Largest multiple of `mult` that divides `total` and is <= target
    (falls back to `total` when total <= target)."""
    if total <= target:
        return total
    best = mult
    t = mult
    while t <= target:
        if total % t == 0:
            best = t
        t += mult
    return best


def _vmem_capacity_bytes():
    try:
        return int(pltpu.get_tpu_info().vmem_capacity_bytes)
    except Exception:
        return 64 << 20   # conservative fallback: v7x per-TensorCore VMEM


# ------------------------------- wrapper ------------------------------------ #
class DSFSpiceACPallas:
    """Pallas version of DSF_SpiceAC.forward: irfft(fb * rfft(x), n=N)."""

    def __init__(self, fb, sample_rate, *, tk_target=2048, tn_target=2048):
        fb = np.asarray(fb, dtype=np.float32)
        N = int(sample_rate)
        # Even N assumed (matches torch.fft.irfft default output length 2*(K-1)).
        assert N % 2 == 0, "even sample_rate assumed"
        K = N // 2 + 1
        F = fb.shape[0]
        assert fb.shape == (F, K)
        Kp = _round_up(K, 128)       # lane-padded number of frequency bins
        Np = _round_up(N, 128)       # lane-padded output length (cropped if needed)

        # Inverse real-DFT basis built ONCE: integer modular phase + float64 trig
        # for numerical robustness at realistic sample rates.
        nk = (np.arange(K, dtype=np.int64)[:, None]
              * np.arange(N, dtype=np.int64)[None, :]) % N          # (K, N)
        ang = 2.0 * np.pi * nk.astype(np.float64) / N
        # irfft weights (even N): 1 at DC & Nyquist, 2 elsewhere.
        w = np.full((K, 1), 2.0, np.float64); w[0] = 1.0; w[-1] = 1.0
        cinv = np.zeros((Kp, Np), np.float64); cinv[:K, :N] = (w / N) * np.cos(ang)
        sinv = np.zeros((Kp, Np), np.float64); sinv[:K, :N] = -(w / N) * np.sin(ang)
        binv = np.concatenate([cinv, sinv], axis=0)                  # (2Kp, Np)

        # Filterbank: zero-pad filters to a sublane multiple (8) and bins to Kp,
        # duplicated for the fused [Re | Im] spectrum layout.
        F_pad = _round_up(F, 8)
        fbp = np.zeros((F_pad, Kp), np.float32); fbp[:F, :K] = fb
        fb2 = np.concatenate([fbp, fbp], axis=1)                     # (F_pad, 2Kp)

        self.N, self.K, self.Kp, self.Np = N, K, Kp, Np
        self.F, self.F_pad = F, F_pad
        self.tk_target, self.tn_target = tk_target, tn_target
        # bf16 basis: halves the dominant HBM stream + native bf16 MXU;
        # accumulation stays f32 (preferred_element_type in the kernel).
        self.binv = jnp.asarray(binv, dtype=jnp.bfloat16)
        self.fb2 = jnp.asarray(fb2)                                  # f32 gains
        self.fb = jnp.asarray(fb)

    def _plan_tiles(self, B, out_itemsize):
        """Pick (TK, TN) and vmem_limit_bytes from the real tiled footprint."""
        phys = _vmem_capacity_bytes()
        budget = int(0.60 * phys)            # safe on v7x (64 MiB) and v5e/v6e
        Fp = self.F_pad
        tk_t, tn_t = self.tk_target, self.tn_target
        while True:
            TK = _pick_tile(2 * self.Kp, tk_t)
            TN = _pick_tile(self.Np, tn_t)
            M = B * Fp
            need = (2 * (B * TK * 4 + Fp * TK * 4)        # xcat + fb2 (double-buffered)
                    + 2 * TK * TN * 2                     # binv bf16 (double-buffered)
                    + 2 * B * Fp * TN * out_itemsize      # output block (double-buffered)
                    + M * TN * 4                          # f32 accumulator scratch
                    + M * TK * (4 + 2))                   # lhs f32 + bf16 intermediates
            if need <= budget or (TK <= 128 and TN <= 128):
                break
            if TK >= TN and tk_t > 128:
                tk_t = max(128, tk_t // 2)
            else:
                tn_t = max(128, tn_t // 2)
        vmem_limit = int(min(max(int(1.25 * need) + (8 << 20), 32 << 20),
                             int(0.90 * phys)))
        return TK, TN, vmem_limit

    def __call__(self, waveform):
        N, K, Kp, Np = self.N, self.K, self.Kp, self.Np
        F, F_pad = self.F, self.F_pad
        B, C, n = waveform.shape
        assert C == 1
        assert n == N, "Input waveform should be of length sample rate"
        x = waveform[:, 0, :].astype(jnp.float32)                    # (B, N)

        # ---- forward real DFT via XLA FFT (shared by all filters) -------- #
        # ~1/F of total FLOPs; avoids streaming an (N, 2Kp) forward basis.
        X = jnp.fft.rfft(x, axis=-1)                                 # (B, K) c64
        pad = Kp - K
        xcat = jnp.concatenate(
            [jnp.pad(jnp.real(X), ((0, 0), (0, pad))),
             jnp.pad(jnp.imag(X), ((0, 0), (0, pad)))], axis=-1)     # (B, 2Kp) f32

        # ---- per-filter gain + inverse real DFT (Pallas, MXU) ------------ #
        out_dtype = waveform.dtype
        TK, TN, vmem_limit = self._plan_tiles(B, waveform.dtype.itemsize)
        nK = (2 * Kp) // TK
        nN = Np // TN

        out_pad = pl.pallas_call(
            _bpf_inv_kernel,
            out_shape=jax.ShapeDtypeStruct((B, F_pad, Np), out_dtype),
            grid=(nN, nK),
            in_specs=[
                pl.BlockSpec((B, TK), lambda ni, ki: (0, ki)),        # spectrum tile
                pl.BlockSpec((F_pad, TK), lambda ni, ki: (0, ki)),    # all filter gains
                pl.BlockSpec((TK, TN), lambda ni, ki: (ki, ni)),      # inv-basis tile
            ],
            out_specs=pl.BlockSpec((B, F_pad, TN), lambda ni, ki: (0, 0, ni)),
            scratch_shapes=[pltpu.VMEM((B * F_pad, TN), jnp.float32)],
            compiler_params=pltpu.CompilerParams(
                dimension_semantics=("parallel", "arbitrary"),
                vmem_limit_bytes=vmem_limit),
        )(xcat, self.fb2, self.binv)

        # Crop only if padding was actually applied (crop = extra HBM copy).
        if F_pad != F or Np != N:
            out_pad = out_pad[:, :F, :N]
        return out_pad                                               # (B, F, N)


def make_synthetic_fb(n_filter, n_freqs):
    """Deterministic stand-in for the SPICE-simulated AC responses: a bank of
    band-pass gain curves, min-max normalized like DSF_SpiceAC._fresponse."""
    f = jnp.arange(n_freqs, dtype=jnp.float32)[None, :]
    centers = jnp.linspace(n_freqs * 0.1, n_freqs * 0.9, n_filter,
                           dtype=jnp.float32)[:, None]
    bw = n_freqs / (2.0 * n_filter)
    gains = jnp.exp(-0.5 * ((f - centers) / bw) ** 2)
    gains = (gains - gains.min()) / (gains.max() - gains.min())
    return gains.astype(jnp.float32)


class LAFESpiceV1Pallas:
    """Pallas version of LAFE_Spice_v1 forward (band-pass filter-bank stage)."""

    def __init__(self, n_filter, sample_rate, max_sample_len):
        self.n_filter = n_filter
        self.sample_rate = sample_rate
        self.max_sample_len = max_sample_len
        self.fb = make_synthetic_fb(n_filter, sample_rate // 2 + 1)
        self.bpf = DSFSpiceACPallas(self.fb, sample_rate)

    def __call__(self, waveform):
        out = self.bpf(waveform)                  # (B, n_filter, sample_rate)
        # TODO(synk): mdl.IAF_Spec (spiking encoder), vtransforms.RandomCrop and the
        # externally-supplied `backbone` have no source provided; only DSF_SpiceAC
        # (and its SPICE-derived filterbank, replaced by a synthetic one) is here.
        return out


if __name__ == "__main__":
    key = jax.random.PRNGKey(0)
    B, n_filter, sample_rate, max_sample_len = 2, 8, 128, 64
    waveform = jax.random.normal(key, (B, 1, sample_rate), dtype=jnp.float32)

    model = LAFESpiceV1Pallas(n_filter=n_filter, sample_rate=sample_rate,
                              max_sample_len=max_sample_len)
    out = model(waveform)
    out = jax.block_until_ready(out)

    # Reference: exact rfft / irfft semantics of DSF_SpiceAC.forward.
    ref = jnp.fft.irfft(model.fb * jnp.fft.rfft(waveform, axis=-1),
                        n=sample_rate, axis=-1)          # (B, F, N)
    assert out.shape == (B, n_filter, sample_rate), out.shape
    assert jnp.allclose(out, ref, atol=1e-2, rtol=1e-2), \
        float(jnp.max(jnp.abs(out - ref)))
    print("KERNEL_OK")
</pallas_src>

<mosaic_0001>
module attributes {stable_mosaic.version = 11 : i64} {
  func.func @_bpf_inv_kernel(%arg0: i32, %arg1: i32, %arg2: memref<2x256xf32, #tpu.memory_space<vmem>>, %arg3: memref<8x256xf32, #tpu.memory_space<vmem>>, %arg4: memref<256x128xbf16, #tpu.memory_space<vmem>>, %arg5: memref<2x8x128xf32, #tpu.memory_space<vmem>>, %arg6: memref<16x128xf32, #tpu.memory_space<vmem>>) attributes {dimension_semantics = [#tpu.dimension_semantics<parallel>, #tpu.dimension_semantics<arbitrary>], iteration_bounds = array<i64: 1, 1>, scalar_prefetch = 0 : i64, scratch_operands = 1 : i64, tpu.core_type = #tpu.core_type<tc>, window_params = [{transform_indices = @transform_0, window_bounds = array<i64: 2, 256>}, {transform_indices = @transform_1, window_bounds = array<i64: 8, 256>}, {transform_indices = @transform_2, window_bounds = array<i64: 256, 128>}, {transform_indices = @transform_3, window_bounds = array<i64: 2, 8, 128>}]} {
    %c0_i32 = arith.constant 0 : i32
    %0 = arith.cmpi eq, %arg1, %c0_i32 : i32
    %1 = arith.extui %0 : i1 to i32
    %c0_i32_0 = arith.constant 0 : i32
    %2 = arith.cmpi ne, %1, %c0_i32_0 : i32
    scf.if %2 {
      %cst_12 = arith.constant 0.000000e+00 : f32
      %20 = vector.broadcast %cst_12 : f32 to vector<16x128xf32>
      %c0_13 = arith.constant 0 : index
      %c0_14 = arith.constant 0 : index
      %21 = vector.load %arg6[%c0_13, %c0_14] : memref<16x128xf32, #tpu.memory_space<vmem>>, vector<16x128xf32>
      tpu.vector_store %arg6[%c0_13, %c0_14], %20 {strides = array<i32>} : memref<16x128xf32, #tpu.memory_space<vmem>>, vector<16x128xf32>,
    } else {
    }
    %c0 = arith.constant 0 : index
    %c0_1 = arith.constant 0 : index
    %3 = vector.load %arg2[%c0, %c0_1] : memref<2x256xf32, #tpu.memory_space<vmem>>, vector<2x256xf32>
    %c0_2 = arith.constant 0 : index
    %c0_3 = arith.constant 0 : index
    %4 = vector.load %arg3[%c0_2, %c0_3] : memref<8x256xf32, #tpu.memory_space<vmem>>, vector<8x256xf32>
    %5 = vector.shape_cast %3 : vector<2x256xf32> to vector<2x1x256xf32>
    %6 = vector.shape_cast %4 : vector<8x256xf32> to vector<1x8x256xf32>
    %7 = vector.broadcast %5 : vector<2x1x256xf32> to vector<2x8x256xf32>
    %8 = vector.broadcast %6 : vector<1x8x256xf32> to vector<2x8x256xf32>
    %9 = arith.mulf %7, %8 : vector<2x8x256xf32>
    %10 = vector.shape_cast %9 : vector<2x8x256xf32> to vector<16x256xf32>
    %c0_4 = arith.constant 0 : index
    %c0_5 = arith.constant 0 : index
    %11 = vector.load %arg6[%c0_4, %c0_5] : memref<16x128xf32, #tpu.memory_space<vmem>>, vector<16x128xf32>
    %12 = arith.truncf %10 : vector<16x256xf32> to vector<16x256xbf16>
    %c0_6 = arith.constant 0 : index
    %c0_7 = arith.constant 0 : index
    %13 = vector.load %arg4[%c0_6, %c0_7] : memref<256x128xbf16, #tpu.memory_space<vmem>>, vector<256x128xbf16>
    %cst = arith.constant dense<0.000000e+00> : vector<16x128xf32>
    %14 = tpu.matmul %12, %13, %cst {dimension_numbers = #tpu.dot_dimension_numbers<[1], [0], [0], [1], [0, 0, 1, 1], [], []>} : vector<16x256xbf16>, vector<256x128xbf16>, vector<16x128xf32> -> vector<16x128xf32>
    %15 = arith.addf %11, %14 : vector<16x128xf32>
    %c0_8 = arith.constant 0 : index
    %c0_9 = arith.constant 0 : index
    %16 = vector.load %arg6[%c0_8, %c0_9] : memref<16x128xf32, #tpu.memory_space<vmem>>, vector<16x128xf32>
    tpu.vector_store %arg6[%c0_8, %c0_9], %15 {strides = array<i32>} : memref<16x128xf32, #tpu.memory_space<vmem>>, vector<16x128xf32>,
    %c0_i32_10 = arith.constant 0 : i32
    %17 = arith.cmpi eq, %arg1, %c0_i32_10 : i32
    %18 = arith.extui %17 : i1 to i32
    %c0_i32_11 = arith.constant 0 : i32
    %19 = arith.cmpi ne, %18, %c0_i32_11 : i32
    scf.if %19 {
      %c0_12 = arith.constant 0 : index
      %c0_13 = arith.constant 0 : index
      %20 = vector.load %arg6[%c0_12, %c0_13] : memref<16x128xf32, #tpu.memory_space<vmem>>, vector<16x128xf32>
      %21 = vector.shape_cast %20 : vector<16x128xf32> to vector<2x8x128xf32>
      %c0_14 = arith.constant 0 : index
      %c0_15 = arith.constant 0 : index
      %c0_16 = arith.constant 0 : index
      %22 = vector.load %arg5[%c0_14, %c0_15, %c0_16] : memref<2x8x128xf32, #tpu.memory_space<vmem>>, vector<2x8x128xf32>
      tpu.vector_store %arg5[%c0_14, %c0_15, %c0_16], %21 {strides = array<i32>} : memref<2x8x128xf32, #tpu.memory_space<vmem>>, vector<2x8x128xf32>,
    } else {
    }
    return
  }
  func.func @transform_0(%arg0: i32, %arg1: i32) -> (i32, i32) {
    %c0_i32 = arith.constant 0 : i32
    %c0_i32_0 = arith.constant 0 : i32
    return %c0_i32, %arg1 : i32, i32
  }
  func.func @transform_1(%arg0: i32, %arg1: i32) -> (i32, i32) {
    %c0_i32 = arith.constant 0 : i32
    %c0_i32_0 = arith.constant 0 : i32
    return %c0_i32, %arg1 : i32, i32
  }
  func.func @transform_2(%arg0: i32, %arg1: i32) -> (i32, i32) {
    %c0_i32 = arith.constant 0 : i32
    return %arg1, %arg0 : i32, i32
  }
  func.func @transform_3(%arg0: i32, %arg1: i32) -> (i32, i32, i32) {
    %c0_i32 = arith.constant 0 : i32
    %c0_i32_0 = arith.constant 0 : i32
    %c0_i32_1 = arith.constant 0 : i32
    return %c0_i32, %c0_i32_0, %arg0 : i32, i32, i32
  }
}

</mosaic_0001>

<bundles_post_ra>
// kernel: tpu_custom_call.1
= control target key start
LH: loop header
LB: loop body
LE: loop exit
PB: predicated region body
PF: predicated region fallthrough
CT: control target
= control target key end

     0   :  { %8 = vsyncpa [#allocation4], 0  ;;  %s486_s0 = inlined_call_operand.hbm [shape: f32[2,256], index: 0, kind: input, shape index: {}]   ;;  %s487_s1 = inlined_call_operand.hbm [shape: f32[8,256], index: 1, kind: input, shape index: {}]   ;;  %s488_s2 = inlined_call_operand.hbm [shape: bf16[256,128], index: 2, kind: input, shape index: {}]   ;;  %s489_s3 = inlined_call_operand.hbm [shape: f32[2,8,128], index: 3, kind: output, shape index: {}]  }
   0x1   :  { %9 = vsyncpa [#allocation7], 0 }
   0x2   :  { %10 = vsyncpa [#allocation5], 0  ;;  %s446_s12 = smov [#allocation6]   ;;  %s447_s14 = smov [#allocation3]  }
   0x3   :  { %s27_s13 = sshll.u32 %s446_s12, 4  ;;  %s17_s15 = sshll.u32 %s447_s14, 4  ;;  %s28_s13 = int_to_ptr.vmem [resolvable:$true] %s27_s13  ;;  %s18_s15 = int_to_ptr.vmem [resolvable:$true] %s17_s15 }
   0x4   :  { %s368_s16 = scalar_lea.vmem %s28_s13, 256  ;;  %p373_p1 = scmp.lt.s32.totalorder %s28_s13, %s28_s13 }
   0x5   :  { %p369_p0 = scmp.ne.s32.totalorder %s28_s13, %s368_s16  ;;  %p374_p2 = scmp.lt.s32.totalorder %s368_s16, %s368_s16 }
   0x7   :  { %p375_p3 = por %p374_p2, %p373_p1 }
   0x9   :  { %p376_p4 = pnand %p375_p3, %p369_p0 }
   0xb   :  { %379 = shalt.err (!%p376_p4)
}
   0xc   :  { %30 = dma.hbm_to_vmem [thread:$0]  %s487_s1, 256, %s28_s13, [#allocation7]  }
   0xd   :  { %s388_s19 = scalar_lea.vmem %s18_s15, 64  ;;  %p393_p6 = scmp.lt.s32.totalorder %s18_s15, %s18_s15 }
   0xe   :  { %p389_p5 = scmp.ne.s32.totalorder %s18_s15, %s388_s19  ;;  %p394_p7 = scmp.lt.s32.totalorder %s388_s19, %s388_s19 }
  0x10   :  { %p395_p8 = por %p394_p7, %p393_p6 }
  0x12   :  { %p396_p9 = pnand %p395_p8, %p389_p5 }
  0x14   :  { %399 = shalt.err (!%p396_p9)
}
  0x15   :  { %20 = dma.hbm_to_vmem [thread:$0]  %s486_s0, 64, %s18_s15, [#allocation4]  }
  0x16   :  { %s448_s22 = smov [#allocation8]  }
  0x17   :  { %s36_s23 = sshll.u32 %s448_s22, 4  ;;  %s37_s23 = int_to_ptr.vmem [resolvable:$true] %s36_s23 }
  0x18   :  { %s408_s24 = scalar_lea.vmem %s37_s23, 2048  ;;  %p413_p11 = scmp.lt.s32.totalorder %s37_s23, %s37_s23 }
  0x19   :  { %p409_p10 = scmp.ne.s32.totalorder %s37_s23, %s408_s24  ;;  %p414_p12 = scmp.lt.s32.totalorder %s408_s24, %s408_s24 }
  0x1b   :  { %p415_p13 = por %p414_p12, %p413_p11 }
  0x1d   :  { %p416_p0 = pnand %p415_p13, %p409_p10 }
  0x1f   :  { %419 = shalt.err (!%p416_p0)
}
  0x20   :  { %s449_s1 = smov 64   ;;  %s450_s25 = smov 4  }
  0x21   :  { %42 = dma.hbm_to_vmem [thread:$0]  %s488_s2, 2048, %s37_s23, [#allocation7], %s449_s1, %s449_s1, %s450_s25  }
  0x22   :  { %440 = dma.done.wait [#allocation4], 64  }
  0x23   :  { %441 = vsyncadd [#allocation4], 4294967232 }
  0x24   :  { %442 = dma.done.wait [#allocation7], 2304  }
  0x25   :  { %443 = vsyncadd [#allocation7], 4294964992  ;;  %v344_v0 = vld [vmem:[#allocation8 + $0x78] sm:$0xff]   ;;  %v346_v2 = vld [vmem:[#allocation8 + $0x70] sm:$0xff]   ;;  %v71_v5 = vlaneseq  ;;  %s451_s0 = smov [#allocation9]  }
  0x26   :  { %v345_v1 = vld [vmem:[#allocation8 + $0x38] sm:$0xff]   ;;  %314 = vmatprep.subr.bf16.mxu0 %v344_v0  ;;  %v347_v3 = vld [vmem:[#allocation8 + $0x30] sm:$0xff]   ;;  %v348_v4 = vld [vmem:[#allocation8 + $0x68] sm:$0xff]   ;;  %s284_s2 = sshll.u32 %s451_s0, 4  ;;  %s285_s2 = int_to_ptr.vmem [resolvable:$true] %s284_s2 }
  0x27   :  { %315 = vmatpush3.bf16.msra.mxu0 %v345_v1  ;;  %v349_v6 = vld [vmem:[#allocation8 + $0x28] sm:$0xff]   ;;  %v350_v7 = vld [vmem:[#allocation8 + $0x60] sm:$0xff]   ;;  %v72_v8 = vshrl.u32 %v71_v5, 7  ;;  %v352_v10 = vld [vmem:[#allocation8 + $0x58] sm:$0xff]   ;;  %s420_s28 = scalar_lea.vmem %s285_s2, 256  ;;  %p425_p2 = scmp.lt.s32.totalorder %s285_s2, %s285_s2 }
  0x28   :  { %316 = vmatprep.subr.bf16.mxu0 %v346_v2  ;;  %v351_v9 = vld [vmem:[#allocation8 + $0x20] sm:$0xff]   ;;  %v353_v12 = vld [vmem:[#allocation8 + $0x18] sm:$0xff]   ;;  %v354_v13 = vld [vmem:[#allocation8 + $0x50] sm:$0xff]   ;;  %p421_p1 = scmp.ne.s32.totalorder %s285_s2, %s420_s28  ;;  %p426_p3 = scmp.lt.s32.totalorder %s420_s28, %s420_s28 }
  0x29   :  { %v77_v11 = vsub.s32 1, %v72_v8  ;;  %v297_v14 = vld.sshfl [vmem:[#allocation3] sm:$0x33 pattern:$0x75316420]  ;;  %v61_v15 = vld [vmem:[#allocation6 + $0x8] sm:$0xff] }
  0x2a   :  { %v70_v16 = vcombine.high %v297_v14, %v297_v14  ;;  %v73_v18 = vsub.s32 0, %v72_v8  ;;  %v355_v19 = vld [vmem:[#allocation8 + $0x10] sm:$0xff]   ;;  %v356_v22 = vld [vmem:[#allocation8 + $0x48] sm:$0xff]   ;;  %v358_v29 = vld [vmem:[#allocation8 + $0x40] sm:$0xff]   ;;  %p427_p4 = por %p426_p3, %p425_p2 }
  0x2b   :  { %317 = vmatpush3.bf16.msra.mxu0 %v347_v3  ;;  %v78_v17 = vrot.slane %v297_v14, %v77_v11  ;;  %v357_v26 = vld [vmem:[#allocation8 + $0x8] sm:$0xff]   ;;  %v60_v28 = vld [vmem:[#allocation6] sm:$0xff]  ;;  %v359_v32 = vld [vmem:[#allocation8] sm:$0xff]  }
  0x2c   :  { %318 = vmatprep.subr.bf16.mxu0 %v348_v4  ;;  %v86_v20 = vrot.slane %v70_v16, %v77_v11  ;;  %v74_v24 = vrot.slane %v297_v14, %v73_v18  ;;  %v82_v25 = vrot.slane %v70_v16, %v73_v18  ;;  %p428_p5 = pnand %p427_p4, %p421_p1 }
  0x2d   :  { %v92_v21 = vmul.f32 %v78_v17, %v61_v15 }
  0x2e   :  { %v94_v23 = vmul.f32 %v86_v20, %v61_v15  ;;  %v91_v30 = vmul.f32 %v74_v24, %v60_v28  ;;  %v93_v31 = vmul.f32 %v82_v25, %v60_v28 }
  0x2f   :  { %319 = vmatpush3.bf16.msra.mxu0 %v349_v6 }
  0x30   :  { %320 = vmatprep.subr.bf16.mxu0 %v350_v7  ;;  %v98_v27 = vpack.c.bf16 %v94_v23, %v92_v21  ;;  %v97_v33 = vpack.c.bf16 %v93_v31, %v91_v30 }
  0x32   :  { %259 = vmatprep.mubr.bf16.mxu0 %v98_v27 }
  0x33   :  { %321 = vmatpush3.bf16.msra.mxu0 %v351_v9 }
  0x34   :  { %322 = vmatprep.subr.bf16.mxu0 %v352_v10 }
  0x37   :  { %323 = vmatpush3.bf16.msra.mxu0 %v353_v12 }
  0x38   :  { %324 = vmatprep.subr.bf16.mxu0 %v354_v13 }
  0x3b   :  { %325 = vmatpush3.bf16.msra.mxu0 %v355_v19 }
  0x3c   :  { %326 = vmatprep.subr.bf16.mxu0 %v356_v22 }
  0x3f   :  { %327 = vmatpush3.bf16.msra.mxu0 %v357_v26 }
  0x40   :  { %328 = vmatprep.subr.bf16.mxu0 %v358_v29 }
  0x43   :  { %329 = vmatpush3.bf16.msra.mxu0 %v359_v32 }
  0x46   :  { %260 = vmatmul.mubr.bf16.vlgmr.msra.gmra.mxu0 %v97_v33 }
 0x106   :  { %v330_v34 = vpop.f32.mrf.mxu0 }
 0x108   :  { %v331_v35 = vpop.f32.mrf.mxu0 }
 0x109   :  { %v332_v36 = vadd.f32 %v331_v35, %v330_v34 }
 0x10a   :  { %v333_v37 = vpop.f32.mrf.mxu0 }
 0x10b   :  { %277 = vst [vmem:[#allocation9] sm:$0xff] %v332_v36 }
 0x10c   :  { %v334_v38 = vpop.f32.mrf.mxu0 }
 0x10d   :  { %v335_v39 = vadd.f32 %v334_v38, %v333_v37 }
 0x10f   :  { %278 = vst [vmem:[#allocation9 + $0x8] sm:$0xff] %v335_v39 }
 0x110   :  { %431 = shalt.err (!%p428_p5)
}
 0x111   :  { %s452_s29 = smov 128   ;;  %s453_s30 = smov 8  }
 0x112   :  { %290 = dma.vmem_to_hbm [thread:$0]  %s285_s2, 256, %s489_s3, [#allocation5], %s452_s29, %s452_s29, %s453_s30  }
 0x113   :  { %444 = dma.done.wait [#allocation5], 256  }
 0x114   :  { %445 = vsyncadd [#allocation5], 4294967040 }
 0x115   :  { %294 = vsyncpa [#allocation4], 1 }
 0x116   :  { %295 = vsyncpa [#allocation7], 1 }
 0x117   :  { %296 = vsyncpa [#allocation5], 1 }

</bundles_post_ra>
